<compile_context>
chip_gen: v5e
topology: v5e:2x2
jax: 0.10.0
libtpu: 0.0.40
codegen_flags: <defaults>
</compile_context>

<pallas_src>
import jax
import jax.numpy as jnp
from jax.experimental import pallas as pl
from jax.experimental.pallas import tpu as pltpu

# ---- config (mirrors `opt`) -------------------------------------------------
N_CHANNELS = 4          # opt.n_channels
HIDDEN_SIZE = 32        # opt.hidden_size  (node_rep width)
HIDDEN_SIZE_FULL = 32   # opt.hidden_size_full
NT_CONV = True          # opt.nt_conv
ZERONUC = False         # opt.zeronuc
ZERONODES = False       # opt.zeronodes
BN_EPS = 1e-5


# ---- kernel -----------------------------------------------------------------
def _ensemble_kernel(x_ref, nc_ref, wn_ref, bnb_ref, w1x_ref, wo_ref, bo_ref,
                     o_ref):
    # x block:  (bt, C, st)         channels on sublanes, positions on lanes
    # nc block: (1, bt, HF, 1)      per-(member,batch) node contribution
    # weights:  leading member axis (size 1) selected by the innermost grid axis
    wn = wn_ref[0]      # (C, C)
    bnb = bnb_ref[0]    # (C, 1)
    w1x = w1x_ref[0]    # (HF, C)
    wo = wo_ref[0]      # (3, HF)
    bo = bo_ref[0]      # (3, 1)
    nc = nc_ref[0]      # (bt, HF, 1)  tiny, load once

    bt = x_ref.shape[0]
    for bi in range(bt):            # static unroll over batch rows in the block
        xb = x_ref[bi]              # (C, st)
        if NT_CONV:
            # nucleotide_conv_1 (1x1 conv == W @ x over channels) + ReLU.
            # (BatchNorm_n_1 is folded into the downstream conv1 x-weights.)
            xb = jnp.maximum(
                jnp.dot(wn, xb, preferred_element_type=jnp.float32) + bnb, 0.0)

        # conv1 with BN_n1/BN0 folded into w1x'; node_rep contribution (incl.
        # folded bias) broadcast along the lanes.
        h = jnp.dot(w1x, xb, preferred_element_type=jnp.float32) + nc[bi]
        h = jnp.maximum(h, 0.0)     # F.relu  (BN1 folded into wo'/bo')

        # out (1x1 conv to 3 channels) + softmax over the 3-row sublane axis.
        logits = jnp.dot(wo, h, preferred_element_type=jnp.float32) + bo
        m = jnp.max(logits, axis=0, keepdims=True)
        e = jnp.exp(logits - m)
        inv = pl.reciprocal(jnp.sum(e, axis=0, keepdims=True), approx=True)
        o_ref[0, bi] = (e * inv).astype(o_ref.dtype)


# ---- parameter folding (inference-mode BN folded into conv weights) ---------
def _fold_params(params):
    (wn, bnb, sn, tn, s0x, t0x, s0n, t0n,
     w1x, w1n, b1, s1, t1, wo, bo) = params

    # Fold BN_n1 + BN0(x-part) into conv1's x-weights, BN0(node-part) into
    # conv1's node-weights, and BN1 into the output conv (exact algebra).
    a_x = (sn * s0x).reshape(-1)                   # (C,)
    c_x = (tn * s0x + t0x) @ w1x                   # (1, HF)
    w1x_f = w1x * a_x[:, None]                     # (C, HF) = diag(a_x) @ w1x
    w1n_f = w1n * s0n.reshape(-1)[:, None]         # (H, HF)
    c_n = t0n @ w1n                                # (1, HF)
    b1_f = b1 + c_x + c_n                          # (1, HF)
    wo_f = wo * s1.reshape(-1)[:, None]            # (HF, 3) = diag(s1) @ wo
    bo_f = t1 @ wo + bo                            # (1, 3)

    # Transpose to the channels-on-sublane (C_out, C_in) "column" layout.
    wn_col = wn.T                                  # (C, C)
    bnb_col = bnb.reshape(-1, 1)                   # (C, 1)
    w1x_col = w1x_f.T                              # (HF, C)
    wo_col = wo_f.T                                # (3, HF)
    bo_col = bo_f.reshape(-1, 1)                   # (3, 1)
    return wn_col, bnb_col, w1x_col, w1n_f, b1_f, wo_col, bo_col


# ---- tiling ------------------------------------------------------------------
def _round_up(a, m):
    return ((a + m - 1) // m) * m


def _choose_tiles(bs, sl, *, target_lanes=16384, target_positions=16384):
    """Pick (batch_tile, seq_tile, padded_seq_len).

    seq_tile is a multiple of 128; sl is padded up to a multiple of seq_tile
    (no full-sequence fallback).  When the seq tile alone is small, several
    batch rows are blocked per step.  If the parallel part of the grid would
    collapse to a single step (idle TensorCore on v7x), the tile is split.
    """
    sl128 = _round_up(sl, 128)
    st = min(_round_up(min(target_lanes, sl128), 128), sl128)

    # Batch blocking: largest divisor of bs keeping per-step positions near target.
    max_bt = max(1, target_positions // st)
    bt = 1
    for d in range(1, bs + 1):
        if bs % d == 0 and d <= max_bt:
            bt = d

    def n_parallel(st_, bt_):
        return (bs // bt_) * (_round_up(sl, st_) // st_)

    if n_parallel(st, bt) < 2:        # keep both v7x TensorCores busy
        if st >= 256:
            st = _round_up(st // 2, 128)
        elif bt >= 2:
            bt = max(d for d in range(1, bt) if bs % d == 0)
        # else: sl <= 128 and bs == 1 -> nothing to split.

    sl_pad = _round_up(sl, st)
    return bt, st, sl_pad


# ---- fused ensemble wrapper (mirrors SpliceGraphEnsemble.forward) ------------
def splice_graph_ensemble_forward(x, node_rep, params_list, *,
                                  target_lanes=16384, target_positions=16384):
    """x: (bs, n_channels, sl) f32; node_rep: (bs, hidden_size) f32.
    Returns a list (one per ensemble member) of (bs, 3, sl) channel-softmax
    outputs in the PyTorch layout.  All members run in a single pallas_call."""
    bs, C, sl = x.shape
    E = len(params_list)

    if ZERONUC:
        x = jnp.zeros_like(x)
    if ZERONODES:
        node_rep = jnp.zeros_like(node_rep)

    folded = [_fold_params(p) for p in params_list]
    wn = jnp.stack([f[0] for f in folded])        # (E, C, C)
    bnb = jnp.stack([f[1] for f in folded])       # (E, C, 1)
    w1x = jnp.stack([f[2] for f in folded])       # (E, HF, C)
    wo = jnp.stack([f[5] for f in folded])        # (E, 3, HF)
    bo = jnp.stack([f[6] for f in folded])        # (E, 3, 1)
    HF = w1x.shape[1]

    # Per-(member, batch) node contribution to conv1 (folded bias included).
    nc = jnp.stack([(node_rep @ f[3] + f[4]).reshape(bs, HF, 1)
                    for f in folded])             # (E, bs, HF, 1)

    bt, st, sl_pad = _choose_tiles(bs, sl, target_lanes=target_lanes,
                                   target_positions=target_positions)
    if sl_pad != sl:
        x = jnp.pad(x, ((0, 0), (0, 0), (0, sl_pad - sl)))

    # Member axis innermost + x index_map independent of it -> the x tile is
    # fetched once and stays resident in VMEM across all E members.
    grid = (bs // bt, sl_pad // st, E)

    out = pl.pallas_call(
        _ensemble_kernel,
        out_shape=jax.ShapeDtypeStruct((E, bs, 3, sl_pad), jnp.float32),
        grid=grid,
        in_specs=[
            pl.BlockSpec((bt, C, st), lambda b, s, e: (b, 0, s)),        # x
            pl.BlockSpec((1, bt, HF, 1), lambda b, s, e: (e, b, 0, 0)),  # node contrib
            pl.BlockSpec((1, C, C), lambda b, s, e: (e, 0, 0)),          # wn
            pl.BlockSpec((1, C, 1), lambda b, s, e: (e, 0, 0)),          # bnb
            pl.BlockSpec((1, HF, C), lambda b, s, e: (e, 0, 0)),         # w1x
            pl.BlockSpec((1, 3, HF), lambda b, s, e: (e, 0, 0)),         # wo
            pl.BlockSpec((1, 3, 1), lambda b, s, e: (e, 0, 0)),          # bo
        ],
        out_specs=pl.BlockSpec((1, bt, 3, st), lambda b, s, e: (e, b, 0, s)),
        compiler_params=pltpu.CompilerParams(
            dimension_semantics=("parallel", "parallel", "arbitrary")),
    )(x, nc, wn, bnb, w1x, wo, bo)

    if sl_pad != sl:
        out = out[..., :sl]
    return [out[e] for e in range(E)]


# ---- deterministic parameter init -------------------------------------------
def _bn_affine(key, c):
    kg, kb, km, kv = jax.random.split(key, 4)
    gamma = 1.0 + 0.1 * jax.random.normal(kg, (c,), jnp.float32)
    beta = 0.1 * jax.random.normal(kb, (c,), jnp.float32)
    rmean = 0.1 * jax.random.normal(km, (c,), jnp.float32)
    rvar = 1.0 + 0.1 * jnp.abs(jax.random.normal(kv, (c,), jnp.float32))
    scale = gamma / jnp.sqrt(rvar + BN_EPS)
    shift = beta - rmean * scale
    return scale.reshape(1, c), shift.reshape(1, c)


def init_params(key):
    C, H, HF = N_CHANNELS, HIDDEN_SIZE, HIDDEN_SIZE_FULL
    ks = jax.random.split(key, 8)

    # nucleotide_conv_1: Conv1d(C, C, 1) stored transposed (C_in, C_out)
    wn = 0.1 * jax.random.normal(ks[0], (C, C), jnp.float32)
    bnb = 0.1 * jax.random.normal(ks[1], (1, C), jnp.float32)
    sn, tn = _bn_affine(ks[2], C)                                # batch_norm_n_1

    s0, t0 = _bn_affine(ks[3], C + H)                            # batch_norm0
    s0x, t0x = s0[:, :C], t0[:, :C]
    s0n, t0n = s0[:, C:], t0[:, C:]

    # conv1: Conv1d(C+H, HF, 1) stored transposed (C+H, HF), then split
    w1 = 0.1 * jax.random.normal(ks[4], (C + H, HF), jnp.float32)
    w1x, w1n = w1[:C, :], w1[C:, :]
    b1 = 0.1 * jax.random.normal(ks[5], (1, HF), jnp.float32)
    s1, t1 = _bn_affine(ks[6], HF)                               # batch_norm1

    # out: Conv1d(HF, 3, 1) stored transposed (HF, 3)
    k7a, k7b = jax.random.split(ks[7])
    wo = 0.1 * jax.random.normal(k7a, (HF, 3), jnp.float32)
    bo = 0.1 * jax.random.normal(k7b, (1, 3), jnp.float32)

    return (wn, bnb, sn, tn, s0x, t0x, s0n, t0n,
            w1x, w1n, b1, s1, t1, wo, bo)


# ---- plain-JAX reference (original unfolded math, no Pallas) -----------------
def reference_forward(x, node_rep, params):
    (wn, bnb, sn, tn, s0x, t0x, s0n, t0n,
     w1x, w1n, b1, s1, t1, wo, bo) = params
    bs, C, sl = x.shape
    xr = jnp.transpose(x, (0, 2, 1)).reshape(bs * sl, C)
    nr = jnp.repeat(node_rep, sl, axis=0)
    if NT_CONV:
        xr = jnp.maximum(xr @ wn + bnb, 0.0) * sn + tn
    xb = xr * s0x + t0x
    nb = nr * s0n + t0n
    h = jnp.maximum(xb @ w1x + nb @ w1n + b1, 0.0) * s1 + t1
    logits = h @ wo + bo
    p = jax.nn.softmax(logits, axis=-1)
    return jnp.transpose(p.reshape(bs, sl, 3), (0, 2, 1))


# ---- main --------------------------------------------------------------------
if __name__ == "__main__":
    key = jax.random.PRNGKey(0)
    k_x, k_n, k_p1, k_p2 = jax.random.split(key, 4)

    bs, sl = 2, 512
    x = jax.random.normal(k_x, (bs, N_CHANNELS, sl), jnp.float32)
    node_rep = jax.random.normal(k_n, (bs, HIDDEN_SIZE), jnp.float32)

    # Two ensemble members, each with its own parameters.
    ensemble_params = [init_params(k_p1), init_params(k_p2)]

    outs = splice_graph_ensemble_forward(x, node_rep, ensemble_params)
    outs = jax.block_until_ready(outs)

    # Tolerances loosened slightly vs exact f32 because the softmax divide
    # uses the EUP approximate reciprocal (pl.reciprocal(approx=True)).
    for out, p in zip(outs, ensemble_params):
        ref = jax.block_until_ready(reference_forward(x, node_rep, p))
        assert out.shape == (bs, 3, sl), out.shape
        assert jnp.allclose(out, ref, atol=5e-3, rtol=5e-3), "mismatch vs reference"
        assert jnp.allclose(jnp.sum(out, axis=1), 1.0, atol=5e-3), "softmax not normalized"

    print("KERNEL_OK")
</pallas_src>

<mosaic_0001>
module attributes {stable_mosaic.version = 11 : i64} {
  func.func @_ensemble_kernel(%arg0: i32, %arg1: i32, %arg2: i32, %arg3: memref<2x4x256xf32, #tpu.memory_space<vmem>>, %arg4: memref<1x2x32x1xf32, #tpu.memory_space<vmem>>, %arg5: memref<1x4x4xf32, #tpu.memory_space<vmem>>, %arg6: memref<1x4x1xf32, #tpu.memory_space<vmem>>, %arg7: memref<1x32x4xf32, #tpu.memory_space<vmem>>, %arg8: memref<1x3x32xf32, #tpu.memory_space<vmem>>, %arg9: memref<1x3x1xf32, #tpu.memory_space<vmem>>, %arg10: memref<1x2x3x256xf32, #tpu.memory_space<vmem>>) attributes {dimension_semantics = [#tpu.dimension_semantics<parallel>, #tpu.dimension_semantics<parallel>, #tpu.dimension_semantics<arbitrary>], iteration_bounds = array<i64: 1, 2, 2>, scalar_prefetch = 0 : i64, scratch_operands = 0 : i64, tpu.core_type = #tpu.core_type<tc>, window_params = [{transform_indices = @transform_0, window_bounds = array<i64: 2, 4, 256>}, {transform_indices = @transform_1, window_bounds = array<i64: 1, 2, 32, 1>}, {transform_indices = @transform_2, window_bounds = array<i64: 1, 4, 4>}, {transform_indices = @transform_3, window_bounds = array<i64: 1, 4, 1>}, {transform_indices = @transform_4, window_bounds = array<i64: 1, 32, 4>}, {transform_indices = @transform_5, window_bounds = array<i64: 1, 3, 32>}, {transform_indices = @transform_6, window_bounds = array<i64: 1, 3, 1>}, {transform_indices = @transform_7, window_bounds = array<i64: 1, 2, 3, 256>}]} {
    %c0 = arith.constant 0 : index
    %c0_0 = arith.constant 0 : index
    %c0_1 = arith.constant 0 : index
    %0 = vector.load %arg5[%c0, %c0_0, %c0_1] : memref<1x4x4xf32, #tpu.memory_space<vmem>>, vector<1x4x4xf32>
    %1 = vector.shape_cast %0 : vector<1x4x4xf32> to vector<4x4xf32>
    %c0_2 = arith.constant 0 : index
    %c0_3 = arith.constant 0 : index
    %c0_4 = arith.constant 0 : index
    %2 = vector.load %arg6[%c0_2, %c0_3, %c0_4] : memref<1x4x1xf32, #tpu.memory_space<vmem>>, vector<1x4x1xf32>
    %3 = vector.shape_cast %2 : vector<1x4x1xf32> to vector<4x1xf32>
    %c0_5 = arith.constant 0 : index
    %c0_6 = arith.constant 0 : index
    %c0_7 = arith.constant 0 : index
    %4 = vector.load %arg7[%c0_5, %c0_6, %c0_7] : memref<1x32x4xf32, #tpu.memory_space<vmem>>, vector<1x32x4xf32>
    %5 = vector.shape_cast %4 : vector<1x32x4xf32> to vector<32x4xf32>
    %c0_8 = arith.constant 0 : index
    %c0_9 = arith.constant 0 : index
    %c0_10 = arith.constant 0 : index
    %6 = vector.load %arg8[%c0_8, %c0_9, %c0_10] : memref<1x3x32xf32, #tpu.memory_space<vmem>>, vector<1x3x32xf32>
    %7 = vector.shape_cast %6 : vector<1x3x32xf32> to vector<3x32xf32>
    %c0_11 = arith.constant 0 : index
    %c0_12 = arith.constant 0 : index
    %c0_13 = arith.constant 0 : index
    %8 = vector.load %arg9[%c0_11, %c0_12, %c0_13] : memref<1x3x1xf32, #tpu.memory_space<vmem>>, vector<1x3x1xf32>
    %9 = vector.shape_cast %8 : vector<1x3x1xf32> to vector<3x1xf32>
    %c0_14 = arith.constant 0 : index
    %c0_15 = arith.constant 0 : index
    %c0_16 = arith.constant 0 : index
    %c0_17 = arith.constant 0 : index
    %10 = vector.load %arg4[%c0_14, %c0_15, %c0_16, %c0_17] : memref<1x2x32x1xf32, #tpu.memory_space<vmem>>, vector<1x2x32x1xf32>
    %11 = vector.shape_cast %10 : vector<1x2x32x1xf32> to vector<2x32x1xf32>
    %c0_18 = arith.constant 0 : index
    %c0_19 = arith.constant 0 : index
    %c0_20 = arith.constant 0 : index
    %12 = vector.load %arg3[%c0_18, %c0_19, %c0_20] : memref<2x4x256xf32, #tpu.memory_space<vmem>>, vector<1x4x256xf32>
    %13 = vector.shape_cast %12 : vector<1x4x256xf32> to vector<4x256xf32>
    %cst = arith.constant dense<0.000000e+00> : vector<4x256xf32>
    %14 = tpu.matmul %1, %13, %cst {dimension_numbers = #tpu.dot_dimension_numbers<[1], [0], [0], [1], [0, 0, 1, 1], [], []>} : vector<4x4xf32>, vector<4x256xf32>, vector<4x256xf32> -> vector<4x256xf32>
    %15 = vector.broadcast %3 : vector<4x1xf32> to vector<4x256xf32>
    %16 = arith.addf %14, %15 : vector<4x256xf32>
    %cst_21 = arith.constant 0.000000e+00 : f32
    %17 = vector.broadcast %cst_21 : f32 to vector<4x256xf32>
    %18 = arith.maximumf %16, %17 : vector<4x256xf32>
    %cst_22 = arith.constant dense<0.000000e+00> : vector<32x256xf32>
    %19 = tpu.matmul %5, %18, %cst_22 {dimension_numbers = #tpu.dot_dimension_numbers<[1], [0], [0], [1], [0, 0, 1, 1], [], []>} : vector<32x4xf32>, vector<4x256xf32>, vector<32x256xf32> -> vector<32x256xf32>
    %20 = vector.extract_strided_slice %11 {offsets = [0, 0, 0], sizes = [1, 32, 1], strides = [1, 1, 1]} : vector<2x32x1xf32> to vector<1x32x1xf32>
    %21 = vector.shape_cast %20 : vector<1x32x1xf32> to vector<32x1xf32>
    %22 = vector.broadcast %21 : vector<32x1xf32> to vector<32x256xf32>
    %23 = arith.addf %19, %22 : vector<32x256xf32>
    %cst_23 = arith.constant 0.000000e+00 : f32
    %24 = vector.broadcast %cst_23 : f32 to vector<32x256xf32>
    %25 = arith.maximumf %23, %24 : vector<32x256xf32>
    %cst_24 = arith.constant dense<0.000000e+00> : vector<3x256xf32>
    %26 = tpu.matmul %7, %25, %cst_24 {dimension_numbers = #tpu.dot_dimension_numbers<[1], [0], [0], [1], [0, 0, 1, 1], [], []>} : vector<3x32xf32>, vector<32x256xf32>, vector<3x256xf32> -> vector<3x256xf32>
    %27 = vector.broadcast %9 : vector<3x1xf32> to vector<3x256xf32>
    %28 = arith.addf %26, %27 : vector<3x256xf32>
    %cst_25 = arith.constant dense<0xFF800000> : vector<256xf32>
    %29 = vector.multi_reduction <maximumf>, %28, %cst_25 [0] : vector<3x256xf32> to vector<256xf32>
    %30 = vector.shape_cast %29 : vector<256xf32> to vector<1x256xf32>
    %31 = vector.broadcast %30 : vector<1x256xf32> to vector<3x256xf32>
    %32 = arith.subf %28, %31 : vector<3x256xf32>
    %33 = math.exp %32 : vector<3x256xf32>
    %cst_26 = arith.constant dense<0.000000e+00> : vector<256xf32>
    %34 = vector.multi_reduction <add>, %33, %cst_26 [0] : vector<3x256xf32> to vector<256xf32>
    %35 = vector.shape_cast %34 : vector<256xf32> to vector<1x256xf32>
    %36 = tpu.reciprocal %35 {approx = true} : vector<1x256xf32> -> vector<1x256xf32>
    %37 = vector.broadcast %36 : vector<1x256xf32> to vector<3x256xf32>
    %38 = arith.mulf %33, %37 : vector<3x256xf32>
    %c0_27 = arith.constant 0 : index
    %c0_28 = arith.constant 0 : index
    %c0_29 = arith.constant 0 : index
    %c0_30 = arith.constant 0 : index
    %39 = vector.load %arg10[%c0_27, %c0_28, %c0_29, %c0_30] : memref<1x2x3x256xf32, #tpu.memory_space<vmem>>, vector<1x1x3x256xf32>
    %40 = vector.shape_cast %39 : vector<1x1x3x256xf32> to vector<3x256xf32>
    %41 = vector.shape_cast %38 : vector<3x256xf32> to vector<1x1x3x256xf32>
    tpu.vector_store %arg10[%c0_27, %c0_28, %c0_29, %c0_30], %41 {strides = array<i32>} : memref<1x2x3x256xf32, #tpu.memory_space<vmem>>, vector<1x1x3x256xf32>,
    %c1 = arith.constant 1 : index
    %c0_31 = arith.constant 0 : index
    %c0_32 = arith.constant 0 : index
    %42 = vector.load %arg3[%c1, %c0_31, %c0_32] : memref<2x4x256xf32, #tpu.memory_space<vmem>>, vector<1x4x256xf32>
    %43 = vector.shape_cast %42 : vector<1x4x256xf32> to vector<4x256xf32>
    %cst_33 = arith.constant dense<0.000000e+00> : vector<4x256xf32>
    %44 = tpu.matmul %1, %43, %cst_33 {dimension_numbers = #tpu.dot_dimension_numbers<[1], [0], [0], [1], [0, 0, 1, 1], [], []>} : vector<4x4xf32>, vector<4x256xf32>, vector<4x256xf32> -> vector<4x256xf32>
    %45 = vector.broadcast %3 : vector<4x1xf32> to vector<4x256xf32>
    %46 = arith.addf %44, %45 : vector<4x256xf32>
    %cst_34 = arith.constant 0.000000e+00 : f32
    %47 = vector.broadcast %cst_34 : f32 to vector<4x256xf32>
    %48 = arith.maximumf %46, %47 : vector<4x256xf32>
    %cst_35 = arith.constant dense<0.000000e+00> : vector<32x256xf32>
    %49 = tpu.matmul %5, %48, %cst_35 {dimension_numbers = #tpu.dot_dimension_numbers<[1], [0], [0], [1], [0, 0, 1, 1], [], []>} : vector<32x4xf32>, vector<4x256xf32>, vector<32x256xf32> -> vector<32x256xf32>
    %50 = vector.extract_strided_slice %11 {offsets = [1, 0, 0], sizes = [1, 32, 1], strides = [1, 1, 1]} : vector<2x32x1xf32> to vector<1x32x1xf32>
    %51 = vector.shape_cast %50 : vector<1x32x1xf32> to vector<32x1xf32>
    %52 = vector.broadcast %51 : vector<32x1xf32> to vector<32x256xf32>
    %53 = arith.addf %49, %52 : vector<32x256xf32>
    %cst_36 = arith.constant 0.000000e+00 : f32
    %54 = vector.broadcast %cst_36 : f32 to vector<32x256xf32>
    %55 = arith.maximumf %53, %54 : vector<32x256xf32>
    %cst_37 = arith.constant dense<0.000000e+00> : vector<3x256xf32>
    %56 = tpu.matmul %7, %55, %cst_37 {dimension_numbers = #tpu.dot_dimension_numbers<[1], [0], [0], [1], [0, 0, 1, 1], [], []>} : vector<3x32xf32>, vector<32x256xf32>, vector<3x256xf32> -> vector<3x256xf32>
    %57 = vector.broadcast %9 : vector<3x1xf32> to vector<3x256xf32>
    %58 = arith.addf %56, %57 : vector<3x256xf32>
    %cst_38 = arith.constant dense<0xFF800000> : vector<256xf32>
    %59 = vector.multi_reduction <maximumf>, %58, %cst_38 [0] : vector<3x256xf32> to vector<256xf32>
    %60 = vector.shape_cast %59 : vector<256xf32> to vector<1x256xf32>
    %61 = vector.broadcast %60 : vector<1x256xf32> to vector<3x256xf32>
    %62 = arith.subf %58, %61 : vector<3x256xf32>
    %63 = math.exp %62 : vector<3x256xf32>
    %cst_39 = arith.constant dense<0.000000e+00> : vector<256xf32>
    %64 = vector.multi_reduction <add>, %63, %cst_39 [0] : vector<3x256xf32> to vector<256xf32>
    %65 = vector.shape_cast %64 : vector<256xf32> to vector<1x256xf32>
    %66 = tpu.reciprocal %65 {approx = true} : vector<1x256xf32> -> vector<1x256xf32>
    %67 = vector.broadcast %66 : vector<1x256xf32> to vector<3x256xf32>
    %68 = arith.mulf %63, %67 : vector<3x256xf32>
    %c0_40 = arith.constant 0 : index
    %c1_41 = arith.constant 1 : index
    %c0_42 = arith.constant 0 : index
    %c0_43 = arith.constant 0 : index
    %69 = vector.load %arg10[%c0_40, %c1_41, %c0_42, %c0_43] : memref<1x2x3x256xf32, #tpu.memory_space<vmem>>, vector<1x1x3x256xf32>
    %70 = vector.shape_cast %69 : vector<1x1x3x256xf32> to vector<3x256xf32>
    %71 = vector.shape_cast %68 : vector<3x256xf32> to vector<1x1x3x256xf32>
    tpu.vector_store %arg10[%c0_40, %c1_41, %c0_42, %c0_43], %71 {strides = array<i32>} : memref<1x2x3x256xf32, #tpu.memory_space<vmem>>, vector<1x1x3x256xf32>,
    return
  }
  func.func @transform_0(%arg0: i32, %arg1: i32, %arg2: i32) -> (i32, i32, i32) {
    %c0_i32 = arith.constant 0 : i32
    %c0_i32_0 = arith.constant 0 : i32
    return %arg0, %c0_i32, %arg1 : i32, i32, i32
  }
  func.func @transform_1(%arg0: i32, %arg1: i32, %arg2: i32) -> (i32, i32, i32, i32) {
    %c0_i32 = arith.constant 0 : i32
    %c0_i32_0 = arith.constant 0 : i32
    %c0_i32_1 = arith.constant 0 : i32
    return %arg2, %arg0, %c0_i32, %c0_i32_0 : i32, i32, i32, i32
  }
  func.func @transform_2(%arg0: i32, %arg1: i32, %arg2: i32) -> (i32, i32, i32) {
    %c0_i32 = arith.constant 0 : i32
    %c0_i32_0 = arith.constant 0 : i32
    %c0_i32_1 = arith.constant 0 : i32
    return %arg2, %c0_i32, %c0_i32_0 : i32, i32, i32
  }
  func.func @transform_3(%arg0: i32, %arg1: i32, %arg2: i32) -> (i32, i32, i32) {
    %c0_i32 = arith.constant 0 : i32
    %c0_i32_0 = arith.constant 0 : i32
    %c0_i32_1 = arith.constant 0 : i32
    return %arg2, %c0_i32, %c0_i32_0 : i32, i32, i32
  }
  func.func @transform_4(%arg0: i32, %arg1: i32, %arg2: i32) -> (i32, i32, i32) {
    %c0_i32 = arith.constant 0 : i32
    %c0_i32_0 = arith.constant 0 : i32
    %c0_i32_1 = arith.constant 0 : i32
    return %arg2, %c0_i32, %c0_i32_0 : i32, i32, i32
  }
  func.func @transform_5(%arg0: i32, %arg1: i32, %arg2: i32) -> (i32, i32, i32) {
    %c0_i32 = arith.constant 0 : i32
    %c0_i32_0 = arith.constant 0 : i32
    %c0_i32_1 = arith.constant 0 : i32
    return %arg2, %c0_i32, %c0_i32_0 : i32, i32, i32
  }
  func.func @transform_6(%arg0: i32, %arg1: i32, %arg2: i32) -> (i32, i32, i32) {
    %c0_i32 = arith.constant 0 : i32
    %c0_i32_0 = arith.constant 0 : i32
    %c0_i32_1 = arith.constant 0 : i32
    return %arg2, %c0_i32, %c0_i32_0 : i32, i32, i32
  }
  func.func @transform_7(%arg0: i32, %arg1: i32, %arg2: i32) -> (i32, i32, i32, i32) {
    %c0_i32 = arith.constant 0 : i32
    %c0_i32_0 = arith.constant 0 : i32
    return %arg2, %arg0, %c0_i32, %arg1 : i32, i32, i32, i32
  }
}

</mosaic_0001>

<bundles_post_ra>
// kernel: tpu_custom_call.1
= control target key start
LH: loop header
LB: loop body
LE: loop exit
PB: predicated region body
PF: predicated region fallthrough
CT: control target
= control target key end

     0   :  { %s1667_s0 = inlined_call_operand.vmem [shape: f32[2,4,512], index: 0, kind: input, shape index: {}]   ;;  %s1668_s1 = inlined_call_operand.vmem [shape: f32[2,2,32,1], index: 1, kind: input, shape index: {}]   ;;  %s1669_s2 = inlined_call_operand.vmem [shape: f32[2,4,4], index: 2, kind: input, shape index: {}]   ;;  %s1670_s3 = inlined_call_operand.vmem [shape: f32[2,4,1], index: 3, kind: input, shape index: {}]   ;;  %s1671_s4 = inlined_call_operand.vmem [shape: f32[2,32,4], index: 4, kind: input, shape index: {}]   ;;  %s1672_s5 = inlined_call_operand.vmem [shape: f32[2,3,32], index: 5, kind: input, shape index: {}]   ;;  %s1673_s6 = inlined_call_operand.vmem [shape: f32[2,3,1], index: 6, kind: input, shape index: {}]   ;;  %s1674_s7 = inlined_call_operand.vmem [shape: f32[2,2,3,512], index: 7, kind: output, shape index: {}]  }
   0x1   :  { %1677 = sst [smem:[#allocation6_spill]] %s1667_s0 }
   0x2   :  { %s1454_s24 = smov 0   ;;  %s1456_s25 = smov 0  }
   0x3   :  { %s1458_s26 = smov 0   ;;  %s1460_s27 = smov 0  }
   0x4   :  { %s1462_s28 = smov 0   ;;  %s1464_s29 = smov 0  }
   0x5   :  { %s1466_s30 = smov 0   ;;  %s1468_s8 = smov 0  }
   0x6   :  { %s1470_s9 = smov 0  }
   0x7 LB: > { %s29_s10 = sadd.s32 1, %s1403_s30  ;;  %s32_s11 = sadd.s32 1, %s1407_s8  ;;  %s1411_s9 = sphi %s1470_s9, %s17_s9   ;;  %s1407_s8 = sphi %s1468_s8, %s1692_s8   ;;  %s1403_s30 = sphi %s1466_s30, %s1691_s30   ;;  %s1399_s29 = sphi %s1464_s29, %s1690_s29   ;;  %s1395_s28 = sphi %s1462_s28, %s1689_s28   ;;  %s1391_s27 = sphi %s1460_s27, %s1688_s27   ;;  %s1387_s26 = sphi %s1458_s26, %s1687_s26   ;;  %s1383_s25 = sphi %s1456_s25, %s1686_s25   ;;  %s1379_s24 = sphi %s1454_s24, %s1685_s24  }
   0x8   : > { %p30_p0 = scmp.ge.s32.totalorder %s29_s10, 2  ;;  %p52_p1 = scmp.ne.s32.totalorder %s1391_s27, %s1387_s26 }
   0x9   : > { %s1188_s12 = sadd.s32 4294967295, %s1411_s9   ;;  %p53_p2 = scmp.eq.s32.totalorder %s1411_s9, 0 }
   0xa   : > { %s1694_s10 = smov (%p30_p0, %s29_s10), 0  ;;  %s1696_s11 = smov (!%p30_p0, %s32_s11), %s1407_s8 }
   0xb   : > { %1678 = sst [smem:[#allocation4_spill]] %s1694_s10  ;;  %p34_p3 = scmp.ge.s32.totalorder %s1696_s11, 2 }
   0xc   : > { %s226_s13 = ssub.s32 %s1403_s30, %s1694_s10  ;;  %p1510_p4 = por %p53_p2, %p52_p1 }
   0xd   : > { %p243_p5 = scmp.ne.s32.totalorder %s1383_s25, %s1379_s24  ;;  %s1698_s11 = smov (%p34_p3, %s1696_s11), 0 }
   0xe   : > { %1680 = sst [smem:[#allocation5_spill]] %s1698_s11  ;;  %s45_s15 = sadd.s32 1, %s1391_s27 }
   0xf   : > { %p244_p6 = scmp.eq.s32.totalorder %s1188_s12, 3  ;;  %s41_s16 = ssub.s32 %s1407_s8, %s1698_s11 }
  0x10   : > { %s233_s17 = sadd.s32 1, %s1383_s25  ;;  %p43_p7 = scmp.eq.s32.totalorder %s41_s16, 0 }
  0x11   : > { %s230_s18 = sor.u32 %s226_s13, %s41_s16  ;;  %p1522_p9 = por %p244_p6, %p243_p5 }
  0x12   : > { %p231_p8 = scmp.eq.s32.totalorder %s230_s18, 0  ;;  %p1191_p10 = scmp.ge.s32.totalorder %s1411_s9, 4 }
  0x13   : > { %s1527_s20 = scalar_select %p43_p7, %s1391_s27, %s45_s15  }
  0x14   : > { %s1530_s21 = scalar_select %p231_p8, %s1383_s25, %s233_s17  }
  0x15   : > { %266 = sbr.rel (%p1191_p10) target bundleno = 38 (0x26), region = 16 }
  0x1a   : > { %269 = sbr.rel (!%p1510_p4) target bundleno = 38 (0x26), region = 20  ;;  %s271_s22 = sand.u32 (%p1510_p4), 1, %s1391_s27  }
  0x1b   : > { %s1246_s23 = sshll.u32 (%p1510_p4), %s1407_s8, 3  ;;  %s1192_s12 = sshll.u32 (%p1510_p4), %s271_s22, 4 }
  0x1c   : > { %s1682_s0 = sld [smem:[#allocation6_spill]] (%p1510_p4)  ;;  %s273_s15 = scalar_lea.vmem (%p1510_p4), [#allocation2], %s1192_s12 }
  0x22   : > { %s279_s18 = scalar_lea.vmem %s1682_s0, %s1246_s23 }
  0x23   : > { %v310_v0 = vld [vmem:[%s279_s18] sm:$0xff]  ;;  %v312_v1 = vld [vmem:[%s279_s18 + $0x10] sm:$0xff] }
  0x24   : > { %311 = vst [vmem:[%s273_s15] sm:$0xff] %v310_v0 }
  0x25   : > { %313 = vst [vmem:[%s273_s15 + $0x8] sm:$0xff] %v312_v1 }
  0x26 PF: > { %p1195_p11 = scmp.ge.s32.totalorder %s1411_s9, 1  ;;  %p368_p12 = scmp.lt.s32.totalorder %s1411_s9, 5 }
  0x28   : > { %p369_p13 = pnand %p1195_p11, %p368_p12 }
  0x29   : > { %p439_p0 = scmp.lt.s32.totalorder (!%p369_p13), %s1395_s28, 1  ;;  %s375_s14 = sand.u32 (!%p369_p13), 1, %s1387_s26  }
  0x2a   : > { %372 = sbr.rel (%p369_p13) target bundleno = 556 (0x22c), region = 82  ;;  %s1196_s17 = sshll.u32 (!%p369_p13), %s375_s14, 4 }
  0x2b   : > { %s377_s12 = scalar_lea.vmem (!%p369_p13), [#allocation2], %s1196_s17 }
  0x2f   : > { %v1413_v2 = vmov 0   ;;  %s1545_s22 = scalar_select %p439_p0, %s1395_s28, 1  ;;  %v488_v3 = vld [vmem:[%s377_s12] sm:$0xff]  ;;  %vm502_vm0 = vcmask 1043456   ;;  %v1222_v5 = vld [vmem:[%s377_s12 + $0x8] sm:$0xff]  ;;  %vm498_vm1 = vcmask 31744  }
  0x30   : > { %1322 = vset.pattern.permute.xlu0 %v1413_v2  ;;  %1323 = vset.pattern.permute.xlu1 %v1413_v2  ;;  %495 = vst [vmem:[#allocation1] ss:$2 sm:$0xff] %v488_v3  ;;  %vm658_vm2 = vcmask 261120   ;;  %vm702_vm3 = vcmask 1042432   ;;  %s1242_s10 = sshll.u32 (%p1522_p9), %s1395_s28, 3 }
  0x31   : > { %1324 = vset.pattern.permute.xlu2 %v1413_v2  ;;  %s1548_s23 = sshll.u32 %s1545_s22, 2  ;;  %s1247_s26 = sshll.u32 %s1545_s22, 6 }
  0x32   : > { %s456_s18 = scalar_lea.vmem %s1670_s3, %s1548_s23  ;;  %s1558_s0 = scalar_lea.vmem %s1668_s1, %s1247_s26 }
  0x33   : > { %v473_v4 = vld [vmem:[%s456_s18] sm:$0xf]  ;;  %s452_s17 = scalar_lea.vmem %s1669_s2, %s1548_s23  ;;  %v483_v7 = vld [vmem:[%s1558_s0 + $0x18] sm:$0xff]  ;;  %v486_v10 = vld [vmem:[%s1558_s0 + $0x30] sm:$0xff]  ;;  %s469_s12 = scalar_lea.vmem %s1673_s6, %s1548_s23 }
  0x34   : > { %491 = vperm.xlu0 %1322, %v473_v4   ;;  %v472_v6 = vld [vmem:[%s452_s17] sm:$0xf]  ;;  %v482_v14 = vld [vmem:[%s1558_s0 + $0x10] sm:$0xff]  ;;  %s1248_s13 = sshll.u32 %s1545_s22, 5  ;;  %v481_v16 = vld [vmem:[%s1558_s0 + $0x8] sm:$0xff]  ;;  %s465_s15 = scalar_lea.vmem %s1672_s5, %s1548_s23 }
  0x35   : > { %v479_v13 = vld [vmem:[%s469_s12] sm:$0x7]  ;;  %561 = vperm.xlu1 %1323, %v482_v14   ;;  %s1584_s26 = scalar_lea.vmem %s1671_s4, %s1248_s13  ;;  %v485_v25 = vld [vmem:[%s1558_s0 + $0x28] sm:$0xff]  ;;  %v487_v33 = vld [vmem:[%s1558_s0 + $0x38] sm:$0xff]  ;;  %s433_s23 = sand.u32 1, %s1379_s24  }
  0x36   : > { %v474_v23 = vld [vmem:[%s1584_s26] sm:$0xff]  ;;  %v475_v32 = vld [vmem:[%s1584_s26 + $0x8] sm:$0xff]  ;;  %v476_v34 = vld [vmem:[%s1584_s26 + $0x10] sm:$0xff]  ;;  %s1197_s14 = sshll.u32 %s433_s23, 4  ;;  %s1241_s24 = sshll.u32 (%p1522_p9), %s1399_s29, 1 }
  0x37   : > { %v496_v8 = vld.sshfl [vmem:[#allocation1] sm:$0xff pattern:$0x75316420]  ;;  %v497_v9 = vld.sshfl [vmem:[#allocation1 + $0x8] sm:$0xff pattern:$0x75316420]  ;;  %s988_s11 = sadd.s32 (%p1522_p9), %s1242_s10, %s1241_s24 }
  0x38   : > { %1206 = vmatpush.msk.msra.mxu0 %vm502_vm0, %v496_v8  ;;  %1208 = vmatpush.msk.msra.mxu1 %vm502_vm0, %v497_v9  ;;  %750 = vst [vmem:[#allocation1] ss:$2 sm:$0xff] %v1222_v5  ;;  %v480_v24 = vld [vmem:[%s1558_s0] sm:$0xff]  ;;  %v477_v36 = vld [vmem:[%s1584_s26 + $0x18] sm:$0xff]  ;;  %s435_s17 = scalar_lea.vmem [#allocation3], %s1197_s14  ;;  %s1243_s12 = sshll.u32 (%p1522_p9), %s988_s11, 2 }
  0x39   : > { %1207 = vmatmul.msk.f32.vlgmr.msra.gmra.mxu0 %vm498_vm1, %v472_v6  ;;  %1209 = vmatmul.msk.f32.vlgmr.msra.gmra.mxu1 %vm498_vm1, %v472_v6  ;;  %v484_v35 = vld [vmem:[%s1558_s0 + $0x20] sm:$0xff]  ;;  %s990_s18 = scalar_lea.vmem (%p1522_p9), %s1674_s7, %s1243_s12 }
  0x3a   : > { %551 = vperm.xlu2 %1324, %v480_v24  }
  0x3c   : > { %566 = vperm.xlu0 %1322, %v483_v7  }
  0x3d   : > { %556 = vperm.xlu1 %1323, %v481_v16   ;;  %v478_v16 = vld [vmem:[%s465_s15] sm:$0x7] }
  0x3f   : > { %v751_v11 = vld.sshfl [vmem:[#allocation1] sm:$0xff pattern:$0x75316420]  ;;  %v752_v12 = vld.sshfl [vmem:[#allocation1 + $0x8] sm:$0xff pattern:$0x75316420] }
  0x40   : > { %1223 = vmatpush.msk.msrb.mxu0 %vm502_vm0, %v751_v11  ;;  %1225 = vmatpush.msk.msrb.mxu1 %vm502_vm0, %v752_v12 }
  0x41   : > { %1224 = vmatmul.msk.f32.vlgmr.msrb.gmra.mxu0 %vm498_vm1, %v472_v6  ;;  %1226 = vmatmul.msk.f32.vlgmr.msrb.gmra.mxu1 %vm498_vm1, %v472_v6 }
  0x42   : > { %816 = vperm.xlu2 %1324, %v487_v33  }
  0x44   : > { %811 = vperm.xlu0 %1322, %v486_v10  }
  0x45   : > { %806 = vperm.xlu1 %1323, %v485_v25  }
  0x4a   : > { %801 = vperm.xlu2 %1324, %v484_v35  }
  0x4c   : > { %655 = vperm.xlu0 %1322, %v479_v13  }
  0x94   : > { %v552_v46 = vpop.permute.xlu2 %551 }
  0x9c   : > { %v817_v53 = vpop.permute.xlu2 %816 }
  0xa6   : > { %v492_v15 = vpop.permute.xlu0 %491 }
  0xa7   : > { %v562_v45 = vpop.permute.xlu1 %561 }
  0xae   : > { %v567_v51 = vpop.permute.xlu0 %566 }
  0xaf   : > { %v557_v52 = vpop.permute.xlu1 %556 }
  0xb6   : > { %v524_v17 = vpop.f32.mrf.mxu0  ;;  %v544_v18 = vpop.f32.mrf.mxu1 }
  0xb7   : > { %v525_v19 = vadd.f32 %v524_v17, %v492_v15  ;;  %v545_v20 = vadd.f32 %v544_v18, %v492_v15  ;;  %v812_v10 = vpop.permute.xlu0 %811  ;;  %v807_v12 = vpop.permute.xlu1 %806 }
  0xb8   : > { %v802_v17 = vpop.permute.xlu2 %801 }
  0xb9   : > { %v547_v21 = vmax.f32 %v525_v19, 0.0  ;;  %v548_v22 = vmax.f32 %v545_v20, 0.0 }
  0xbb   : > { %1210 = vmatpush.msk.msra.mxu2 %vm502_vm0, %v547_v21  ;;  %1215 = vmatpush.msk.msra.mxu3 %vm502_vm0, %v548_v22 }
  0xbc   : > { %1211 = vmatmul.msk.f32.vlgmr.msra.gmra.mxu2 %vm498_vm1, %v474_v23  ;;  %1216 = vmatmul.msk.f32.vlgmr.msra.gmra.mxu3 %vm498_vm1, %v474_v23 }
  0xbe   : > { %v774_v26 = vpop.f32.mrf.mxu0  ;;  %v794_v27 = vpop.f32.mrf.mxu1 }
  0xbf   : > { %v775_v28 = vadd.f32 %v774_v26, %v492_v15  ;;  %v795_v29 = vadd.f32 %v794_v27, %v492_v15 }
  0xc1   : > { %v797_v30 = vmax.f32 %v775_v28, 0.0  ;;  %v798_v31 = vmax.f32 %v795_v29, 0.0 }
  0xc3   : > { %1227 = vmatpush.msk.msra.mxu0 %vm502_vm0, %v797_v30  ;;  %1232 = vmatpush.msk.msra.mxu1 %vm502_vm0, %v798_v31  ;;  %v656_v30 = vpop.permute.xlu0 %655 }
  0xc4   : > { %1212 = vmatmul.msk.f32.gmra.mxu2 %vm498_vm1, %v475_v32  ;;  %1217 = vmatmul.msk.f32.gmra.mxu3 %vm498_vm1, %v475_v32 }
  0xc5   : > { %1228 = vmatmul.msk.f32.vlgmr.msra.gmra.mxu0 %vm498_vm1, %v474_v23  ;;  %1233 = vmatmul.msk.f32.vlgmr.msra.gmra.mxu1 %vm498_vm1, %v474_v23 }
  0xcc   : > { %1213 = vmatmul.msk.f32.gmra.mxu2 %vm498_vm1, %v476_v34  ;;  %1218 = vmatmul.msk.f32.gmra.mxu3 %vm498_vm1, %v476_v34 }
  0xcd   : > { %1229 = vmatmul.msk.f32.gmra.mxu0 %vm498_vm1, %v475_v32  ;;  %1234 = vmatmul.msk.f32.gmra.mxu1 %vm498_vm1, %v475_v32 }
  0xd4   : > { %1214 = vmatmul.msk.f32.gmra.mxu2 %vm498_vm1, %v477_v36  ;;  %1219 = vmatmul.msk.f32.gmra.mxu3 %vm498_vm1, %v477_v36 }
  0xd5   : > { %1230 = vmatmul.msk.f32.gmra.mxu0 %vm498_vm1, %v476_v34  ;;  %1235 = vmatmul.msk.f32.gmra.mxu1 %vm498_vm1, %v476_v34 }
  0xdd   : > { %1231 = vmatmul.msk.f32.gmra.mxu0 %vm498_vm1, %v477_v36  ;;  %1236 = vmatmul.msk.f32.gmra.mxu1 %vm498_vm1, %v477_v36 }
 0x13f   : > { %v604_v37 = vpop.f32.mrf.mxu2  ;;  %v633_v38 = vpop.f32.mrf.mxu3 }
 0x140   : > { %v605_v0 = vadd.f32 %v604_v37, %v552_v46  ;;  %v634_v3 = vadd.f32 %v633_v38, %v552_v46 }
 0x142   : > { %v842_v39 = vpop.f32.mrf.mxu0  ;;  %v871_v40 = vpop.f32.mrf.mxu1  ;;  %v645_v11 = vmax.f32 %v605_v0, 0.0  ;;  %v646_v13 = vmax.f32 %v634_v3, 0.0 }
 0x143   : > { %v843_v24 = vadd.f32 %v842_v39, %v802_v17  ;;  %v872_v25 = vadd.f32 %v871_v40, %v802_v17 }
 0x145   : > { %v883_v28 = vmax.f32 %v843_v24, 0.0  ;;  %v884_v29 = vmax.f32 %v872_v25, 0.0 }
 0x147   : > { %v607_v41 = vpop.f32.mrf.mxu2  ;;  %v636_v42 = vpop.f32.mrf.mxu3 }
 0x148   : > { %v608_v60 = vadd.f32 %v607_v41, %v557_v52  ;;  %v637_v61 = vadd.f32 %v636_v42, %v557_v52 }
 0x14a   : > { %v845_v43 = vpop.f32.mrf.mxu0  ;;  %v874_v44 = vpop.f32.mrf.mxu1  ;;  %v647_v6 = vmax.f32 %v608_v60, 0.0  ;;  %v648_v7 = vmax.f32 %v637_v61, 0.0 }
 0x14b   : > { %v846_v20 = vadd.f32 %v845_v43, %v807_v12  ;;  %v875_v21 = vadd.f32 %v874_v44, %v807_v12 }
 0x14d   : > { %v885_v26 = vmax.f32 %v846_v20, 0.0  ;;  %v886_v27 = vmax.f32 %v875_v21, 0.0 }
 0x14f   : > { %v610_v47 = vpop.f32.mrf.mxu2  ;;  %v639_v48 = vpop.f32.mrf.mxu3 }
 0x150   : > { %v611_v56 = vadd.f32 %v610_v47, %v562_v45  ;;  %v640_v57 = vadd.f32 %v639_v48, %v562_v45 }
 0x152   : > { %v848_v49 = vpop.f32.mrf.mxu0  ;;  %v877_v50 = vpop.f32.mrf.mxu1  ;;  %v649_v4 = vmax.f32 %v611_v56, 0.0  ;;  %v650_v5 = vmax.f32 %v640_v57, 0.0 }
 0x153   : > { %v849_v14 = vadd.f32 %v848_v49, %v812_v10  ;;  %v878_v15 = vadd.f32 %v877_v50, %v812_v10 }
 0x155   : > { %v887_v22 = vmax.f32 %v849_v14, 0.0  ;;  %v888_v23 = vmax.f32 %v878_v15, 0.0 }
 0x157   : > { %v613_v54 = vpop.f32.mrf.mxu2  ;;  %v642_v55 = vpop.f32.mrf.mxu3 }
 0x158   : > { %v614_v58 = vadd.f32 %v613_v54, %v567_v51  ;;  %v643_v59 = vadd.f32 %v642_v55, %v567_v51 }
 0x15a   : > { %v651_v62 = vmax.f32 %v614_v58, 0.0  ;;  %v652_v63 = vmax.f32 %v643_v59, 0.0  ;;  %v851_v1 = vpop.f32.mrf.mxu0  ;;  %v880_v2 = vpop.f32.mrf.mxu1 }
 0x15b   : > { %v852_v8 = vadd.f32 %v851_v1, %v817_v53  ;;  %v881_v9 = vadd.f32 %v880_v2, %v817_v53 }
 0x15c   : > { %674 = vmatpush.msrb.mxu2 %v651_v62  ;;  %694 = vmatpush.msrb.mxu3 %v652_v63 }
 0x15d   : > { %v889_v18 = vmax.f32 %v852_v8, 0.0  ;;  %v890_v19 = vmax.f32 %v881_v9, 0.0 }
 0x15e   : > { %675 = vmatpush.msrb.mxu2 %v649_v4  ;;  %695 = vmatpush.msrb.mxu3 %v650_v5 }
 0x160   : > { %676 = vmatpush.msrb.mxu2 %v647_v6  ;;  %696 = vmatpush.msrb.mxu3 %v648_v7 }
 0x162   : > { %677 = vmatpush.msrb.mxu2 %v645_v11  ;;  %697 = vmatpush.msrb.mxu3 %v646_v13 }
 0x163   : > { %1220 = vmatmul.msk.f32.vlgmr.msrb.gmra.mxu2 %vm658_vm2, %v478_v16  ;;  %1221 = vmatmul.msk.f32.vlgmr.msrb.gmra.mxu3 %vm658_vm2, %v478_v16 }
 0x164   : > { %903 = vmatpush.msra.mxu2 %v889_v18  ;;  %923 = vmatpush.msra.mxu3 %v890_v19 }
 0x166   : > { %904 = vmatpush.msra.mxu2 %v887_v22  ;;  %924 = vmatpush.msra.mxu3 %v888_v23 }
 0x168   : > { %905 = vmatpush.msra.mxu2 %v885_v26  ;;  %925 = vmatpush.msra.mxu3 %v886_v27 }
 0x16a   : > { %906 = vmatpush.msra.mxu2 %v883_v28  ;;  %926 = vmatpush.msra.mxu3 %v884_v29 }
 0x16b   : > { %1237 = vmatmul.msk.f32.vlgmr.msra.gmra.mxu2 %vm658_vm2, %v478_v16  ;;  %1238 = vmatmul.msk.f32.vlgmr.msra.gmra.mxu3 %vm658_vm2, %v478_v16 }
 0x1e6   : > { %v679_v31 = vpop.f32.mrf.mxu2  ;;  %v699_v32 = vpop.f32.mrf.mxu3 }
 0x1e7   : > { %v680_v33 = vadd.f32 %v679_v31, %v656_v30  ;;  %v700_v34 = vadd.f32 %v699_v32, %v656_v30 }
 0x1e9   : > { %v703_v35 = vsel %vm702_vm3, %v680_v33, -inf  ;;  %v710_v36 = vsel %vm702_vm3, %v700_v34, -inf }
 0x1ea   : > { %v704_v37 = vrot.slane %v703_v35, 4  ;;  %v711_v38 = vrot.slane %v710_v36, 4 }
 0x1ec   : > { %v705_v39 = vmax.f32 %v703_v35, %v704_v37  ;;  %v712_v40 = vmax.f32 %v710_v36, %v711_v38 }
 0x1ee   : > { %v706_v41 = vrot.slane %v705_v39, 2  ;;  %v713_v42 = vrot.slane %v712_v40, 2  ;;  %v908_v43 = vpop.f32.mrf.mxu2  ;;  %v928_v44 = vpop.f32.mrf.mxu3 }
 0x1ef   : > { %v909_v45 = vadd.f32 %v908_v43, %v656_v30  ;;  %v929_v46 = vadd.f32 %v928_v44, %v656_v30 }
 0x1f0   : > { %v707_v47 = vmax.f32 %v705_v39, %v706_v41  ;;  %v714_v48 = vmax.f32 %v712_v40, %v713_v42 }
 0x1f1   : > { %v931_v49 = vsel %vm702_vm3, %v909_v45, -inf  ;;  %v938_v50 = vsel %vm702_vm3, %v929_v46, -inf }
 0x1f2   : > { %v708_v51 = vrot.slane %v707_v47, 1  ;;  %v715_v52 = vrot.slane %v714_v48, 1  ;;  %v932_v53 = vrot.slane %v931_v49, 4  ;;  %v939_v54 = vrot.slane %v938_v50, 4 }
 0x1f4   : > { %v709_v55 = vmax.f32 %v707_v47, %v708_v51  ;;  %v716_v56 = vmax.f32 %v714_v48, %v715_v52  ;;  %v933_v57 = vmax.f32 %v931_v49, %v932_v53  ;;  %v940_v58 = vmax.f32 %v938_v50, %v939_v54 }
 0x1f6   : > { %v717_v59 = vsub.f32 %v680_v33, %v709_v55  ;;  %v718_v60 = vsub.f32 %v700_v34, %v716_v56  ;;  %v934_v61 = vrot.slane %v933_v57, 2  ;;  %v941_v62 = vrot.slane %v940_v58, 2 }
 0x1f8   : > { %v719_v63 = vmul.f32 1.442695, %v717_v59  ;;  %v721_v0 = vmul.f32 1.442695, %v718_v60  ;;  %v935_v1 = vmax.f32 %v933_v57, %v934_v61  ;;  %v942_v2 = vmax.f32 %v940_v58, %v941_v62 }
 0x1fa   : > { %1325 = vpow2.f32 %v719_v63  ;;  %v936_v3 = vrot.slane %v935_v1, 1  ;;  %v943_v4 = vrot.slane %v942_v2, 1 }
 0x1fb   : > { %1327 = vpow2.f32 %v721_v0 }
 0x1fc   : > { %v937_v5 = vmax.f32 %v935_v1, %v936_v3  ;;  %v944_v6 = vmax.f32 %v942_v2, %v943_v4 }
 0x1fe   : > { %v945_v7 = vsub.f32 %v909_v45, %v937_v5  ;;  %v946_v8 = vsub.f32 %v929_v46, %v944_v6 }
 0x200   : > { %v1326_v9 = vpop.eup %1325  ;;  %v947_v10 = vmul.f32 1.442695, %v945_v7  ;;  %v949_v11 = vmul.f32 1.442695, %v946_v8 }
 0x201   : > { %v1328_v12 = vpop.eup %1327  ;;  %v723_v13 = vsel %vm702_vm3, %v1326_v9, 0.0 }
 0x202   : > { %v724_v14 = vrot.slane %v723_v13, 4  ;;  %v730_v15 = vsel %vm702_vm3, %v1328_v12, 0.0  ;;  %1329 = vpow2.f32 %v947_v10 }
 0x203   : > { %v731_v16 = vrot.slane %v730_v15, 4  ;;  %1331 = vpow2.f32 %v949_v11 }
 0x204   : > { %v725_v17 = vadd.f32 %v724_v14, %v723_v13 }
 0x205   : > { %v732_v18 = vadd.f32 %v731_v16, %v730_v15 }
 0x206   : > { %v726_v19 = vrot.slane %v725_v17, 2 }
 0x207   : > { %v733_v20 = vrot.slane %v732_v18, 2 }
 0x208   : > { %v1330_v21 = vpop.eup %1329  ;;  %v727_v22 = vadd.f32 %v726_v19, %v725_v17 }
 0x209   : > { %v1332_v23 = vpop.eup %1331  ;;  %v734_v24 = vadd.f32 %v733_v20, %v732_v18  ;;  %v951_v25 = vsel %vm702_vm3, %v1330_v21, 0.0 }
 0x20a   : > { %v728_v26 = vrot.slane %v727_v22, 1  ;;  %v952_v27 = vrot.slane %v951_v25, 4  ;;  %v958_v28 = vsel %vm702_vm3, %v1332_v23, 0.0 }
 0x20b   : > { %v735_v29 = vrot.slane %v734_v24, 1  ;;  %v959_v30 = vrot.slane %v958_v28, 4 }
 0x20c   : > { %v729_v31 = vadd.f32 %v728_v26, %v727_v22  ;;  %v953_v32 = vadd.f32 %v952_v27, %v951_v25 }
 0x20d   : > { %v736_v33 = vadd.f32 %v735_v29, %v734_v24  ;;  %v960_v34 = vadd.f32 %v959_v30, %v958_v28 }
 0x20e   : > { %1333 = vrcp.f32 %v729_v31  ;;  %v954_v35 = vrot.slane %v953_v32, 2 }
 0x20f   : > { %1335 = vrcp.f32 %v736_v33  ;;  %v961_v36 = vrot.slane %v960_v34, 2 }
 0x210   : > { %v955_v37 = vadd.f32 %v954_v35, %v953_v32 }
 0x211   : > { %v962_v38 = vadd.f32 %v961_v36, %v960_v34 }
 0x212   : > { %v956_v39 = vrot.slane %v955_v37, 1 }
 0x213   : > { %v963_v40 = vrot.slane %v962_v38, 1 }
 0x214   : > { %v1334_v41 = vpop.eup %1333  ;;  %v957_v42 = vadd.f32 %v956_v39, %v955_v37 }
 0x215   : > { %v1336_v43 = vpop.eup %1335  ;;  %v964_v44 = vadd.f32 %v963_v40, %v962_v38  ;;  %v739_v46 = vmul.f32 %v1334_v41, %v1326_v9 }
 0x216   : > { %v740_v45 = vmul.f32 %v1336_v43, %v1328_v12  ;;  %1337 = vrcp.f32 %v957_v42 }
 0x217   : > { %1339 = vrcp.f32 %v964_v44 }
 0x218   : > { %v743_v47 = vrot.slane %v740_v45, 4 }
 0x21a   : > { %v744_v48 = vsel %vm502_vm0, %v739_v46, %v743_v47 }
 0x21b   : > { %746 = vst [vmem:[%s435_s17] sm:$0x77] %v744_v48 }
 0x21c   : > { %v1338_v49 = vpop.eup %1337 }
 0x21d   : > { %v1340_v50 = vpop.eup %1339  ;;  %v967_v52 = vmul.f32 %v1338_v49, %v1330_v21 }
 0x21e   : > { %v968_v51 = vmul.f32 %v1340_v50, %v1332_v23 }
 0x21f   : > { %982 = sbr.rel (!%p1522_p9) target bundleno = 556 (0x22c), region = 90 }
 0x220   : > { %v971_v53 = vrot.slane %v968_v51, 4 }
 0x222   : > { %v972_v54 = vsel %vm502_vm0, %v967_v52, %v971_v53  ;;  %v1021_v55 = vld [vmem:[%s435_s17] sm:$0xff] (%p1522_p9) }
 0x223   : > { %1239 = vst [vmem:[%s435_s17 + $0x8] sm:$0x77] %v972_v54 }
 0x224   : > { %1022 = vst [vmem:[%s990_s18] sm:$0xff] %v1021_v55 }
 0x22a   : > { %v1023_v56 = vld [vmem:[%s435_s17 + $0x8] sm:$0xff] }
 0x22b   : > { %1024 = vst [vmem:[%s990_s18 + $0x10] sm:$0xff] %v1023_v56 }
 0x22c PF: > { %s17_s9 = sadd.s32 1, %s1411_s9   ;;  %s1683_s19 = sld [smem:[#allocation4_spill]] }
 0x22d   : > { %p14_p1 = scmp.ge.s32.totalorder %s17_s9, 6   ;;  %s1684_s0 = sld [smem:[#allocation5_spill]] }
 0x22e   : > { %s1685_s24 = smov %s1383_s25  ;;  %s1686_s25 = smov %s1530_s21 }
 0x22f   : > { %s1687_s26 = smov %s1391_s27  ;;  %s1688_s27 = smov %s1527_s20 }
 0x230   : > { %s1689_s28 = smov %s1403_s30  ;;  %s1690_s29 = smov %s1407_s8 }
 0x231   :  { %16 = sbr.rel (!%p14_p1) target bundleno = 7 (0x7), region = 179 }
 0x232   : > { %s1691_s30 = smov %s1683_s19 }
 0x233   : > { %s1692_s8 = smov %s1684_s0 }

</bundles_post_ra>
